<compile_context>
chip_gen: v5e
topology: v5e:2x2
jax: 0.10.0
libtpu: 0.0.40
codegen_flags: <defaults>
</compile_context>

<pallas_src>
import jax
import jax.numpy as jnp
from jax.experimental import pallas as pl
from jax.experimental.pallas import tpu as pltpu


def _make_conv_kernel(KH, KW, Wp, M_span, Co, C):
    """Returns a kernel closure with the static conv geometry baked in."""

    def conv_bias_relu_kernel(x_ref, w_ref, b_ref, o_ref):
        # x_ref: (C, L)         per-batch width-padded image, (h, w) flattened row-major,
        #                       tail-padded by KW-1 so every shifted window slice is in-bounds.
        # w_ref: (KH*KW, Co, C) per-tap weight matrices (tap order r = kh*KW + kw).
        # b_ref: (Co, 1)        f32 bias column.
        # o_ref: (Co, M_span)   per-batch output slab, M_span = OH * Wp (lane-dense, >=128 lanes).
        xv = x_ref[...]                                   # (C, L) bf16, loaded once
        acc = jnp.zeros((Co, M_span), dtype=jnp.float32)  # f32 accumulator (register/VMEM values)
        # In-kernel "im2col": each conv tap is a shifted lane-window of the flattened slab.
        # out[co, oh*Wp + ow] += sum_c w[co, c, kh, kw] * x[c, (oh+kh)*Wp + (ow+kw)]
        for kh in range(KH):
            for kw in range(KW):
                r = kh * KW + kw
                start = kh * Wp + kw                       # static -> static lane slice
                view = xv[:, start:start + M_span]         # (C, M_span) bf16
                acc = acc + jnp.dot(w_ref[r], view,
                                    preferred_element_type=jnp.float32)
        out = jnp.maximum(acc + b_ref[...], 0.0)           # f32 VPU epilogue (bias + ReLU)
        o_ref[...] = out.astype(o_ref.dtype)
        # TODO(synk): nn.Dropout is identity in eval mode; training-mode stochastic dropout
        # (pltpu.prng_seed / pltpu.prng_random_bits masking) is not implemented here.

    return conv_bias_relu_kernel


def cnn_basic_block(x, weight, bias, *, pad=None):
    """Eval-mode forward of CNNBasicBlock.

    x: (N, C, H, W) float32; weight: (Co, C, KH, KW); bias: (Co,).
    Matches PyTorch: ZeroPad2d((pad, pad, 0, 0)) -> Conv2d -> ReLU -> Dropout(identity).
    """
    if pad is not None:
        # ZeroPad2d((pad, pad, 0, 0)): pad the width (last) dim only.
        x = jnp.pad(x, ((0, 0), (0, 0), (0, 0), (pad, pad)))
    N, C, Hp, Wp = x.shape
    Co, Cw, KH, KW = weight.shape
    assert Cw == C
    OH, OW = Hp - KH + 1, Wp - KW + 1
    M_span = OH * Wp                      # per-batch output lane extent (valid cols: ow < OW)
    L = (KH - 1) * Wp + (KW - 1) + M_span  # flattened slab length incl. KW-1 tail pad

    # ---- wrapper-side layout plumbing (one cheap pass; no 9x im2col, no output transpose) ----
    x_flat = x.reshape(N, C, Hp * Wp).astype(jnp.bfloat16)          # free bitcast + bf16 cast
    x_flat = jnp.pad(x_flat, ((0, 0), (0, 0), (0, 0 + L - Hp * Wp)))  # tiny (KW-1) tail pad
    # Per-tap weight matrices: w_stack[kh*KW+kw, co, c] = weight[co, c, kh, kw]
    w_stack = weight.transpose(2, 3, 0, 1).reshape(KH * KW, Co, C).astype(jnp.bfloat16)
    b_col = bias.reshape(Co, 1).astype(jnp.float32)

    kernel = _make_conv_kernel(KH, KW, Wp, M_span, Co, C)

    out_slab = pl.pallas_call(
        kernel,
        out_shape=jax.ShapeDtypeStruct((N, Co, M_span), jnp.float32),
        grid_spec=pltpu.PrefetchScalarGridSpec(
            num_scalar_prefetch=0,
            grid=(N,),  # batch axis: "parallel" -> shards across v7x's 2 TCs, pipelines the x DMA
            in_specs=[
                pl.BlockSpec((None, C, L), lambda n: (n, 0, 0)),        # streamed per-batch slab
                pl.BlockSpec((KH * KW, Co, C), lambda n: (0, 0, 0)),    # resident weights
                pl.BlockSpec((Co, 1), lambda n: (0, 0)),                # resident bias
            ],
            out_specs=pl.BlockSpec((None, Co, M_span), lambda n: (n, 0, 0)),
        ),
        compiler_params=pltpu.CompilerParams(
            dimension_semantics=("parallel",),
            vmem_limit_bytes=32 * 1024 * 1024,  # explicit; fits every generation incl. v7x (64 MiB)
        ),
    )(x_flat, w_stack, b_col)

    # (N, Co, OH*Wp) -> (N, Co, OH, Wp) is a free row-major reshape; drop the KW-1 invalid
    # window-wrap columns with a cheap slice (replaces the old full HBM transpose pass).
    out = out_slab.reshape(N, Co, OH, Wp)[:, :, :, :OW]
    return out


if __name__ == "__main__":
    key = jax.random.PRNGKey(0)
    kx, kw, kb = jax.random.split(key, 3)

    # Small shapes consistent with CNNBasicBlock(4, 8, 3, pad=1, dropout_rate=0.5)
    N, Cin, H, W = 2, 4, 16, 16
    Cout, Kk, PAD = 8, 3, 1

    x = jax.random.normal(kx, (N, Cin, H, W), dtype=jnp.float32)
    weight = jax.random.normal(kw, (Cout, Cin, Kk, Kk), dtype=jnp.float32) * 0.1
    bias = jax.random.normal(kb, (Cout,), dtype=jnp.float32) * 0.1

    out = cnn_basic_block(x, weight, bias, pad=PAD)
    out = jax.block_until_ready(out)

    # Pure-JAX reference (same semantics as PyTorch eval-mode forward), computed on the same
    # bf16-rounded operands the kernel consumes so only f32 accumulation order differs.
    x_bf = x.astype(jnp.bfloat16).astype(jnp.float32)
    w_bf = weight.astype(jnp.bfloat16).astype(jnp.float32)
    x_pad = jnp.pad(x_bf, ((0, 0), (0, 0), (0, 0), (PAD, PAD)))
    ref = jax.lax.conv_general_dilated(
        x_pad, w_bf, window_strides=(1, 1), padding="VALID",
        dimension_numbers=("NCHW", "OIHW", "NCHW"),
    ) + bias.reshape(1, Cout, 1, 1)
    ref = jnp.maximum(ref, 0.0)

    assert out.shape == (N, Cout, H - Kk + 1, W + 2 * PAD - Kk + 1), out.shape
    assert jnp.allclose(out, ref, atol=1e-3, rtol=1e-3)
    print("KERNEL_OK")
</pallas_src>

<mosaic_0001>
module attributes {stable_mosaic.version = 11 : i64} {
  func.func @conv_bias_relu_kernel(%arg0: i32, %arg1: memref<1x4x290xbf16, #tpu.memory_space<vmem>>, %arg2: memref<9x8x4xbf16, #tpu.memory_space<vmem>>, %arg3: memref<8x1xf32, #tpu.memory_space<vmem>>, %arg4: memref<1x8x252xf32, #tpu.memory_space<vmem>>) attributes {dimension_semantics = [#tpu.dimension_semantics<parallel>], iteration_bounds = array<i64: 2>, scalar_prefetch = 0 : i64, scratch_operands = 0 : i64, tpu.core_type = #tpu.core_type<tc>, window_params = [{transform_indices = @transform_0, window_bounds = array<i64: 1, 4, 290>}, {pipeline_mode = #tpu.pipeline_mode<synchronous>, transform_indices = @transform_1, window_bounds = array<i64: 9, 8, 4>}, {pipeline_mode = #tpu.pipeline_mode<synchronous>, transform_indices = @transform_2, window_bounds = array<i64: 8, 1>}, {transform_indices = @transform_3, window_bounds = array<i64: 1, 8, 252>}]} {
    %c0 = arith.constant 0 : index
    %c0_0 = arith.constant 0 : index
    %c0_1 = arith.constant 0 : index
    %0 = vector.load %arg1[%c0, %c0_0, %c0_1] : memref<1x4x290xbf16, #tpu.memory_space<vmem>>, vector<1x4x290xbf16>
    %1 = vector.shape_cast %0 : vector<1x4x290xbf16> to vector<4x290xbf16>
    %cst = arith.constant 0.000000e+00 : f32
    %2 = vector.broadcast %cst : f32 to vector<8x252xf32>
    %3 = vector.extract_strided_slice %1 {offsets = [0, 0], sizes = [4, 252], strides = [1, 1]} : vector<4x290xbf16> to vector<4x252xbf16>
    %c0_2 = arith.constant 0 : index
    %c0_3 = arith.constant 0 : index
    %c0_4 = arith.constant 0 : index
    %4 = vector.load %arg2[%c0_2, %c0_3, %c0_4] : memref<9x8x4xbf16, #tpu.memory_space<vmem>>, vector<1x8x4xbf16>
    %5 = vector.shape_cast %4 : vector<1x8x4xbf16> to vector<8x4xbf16>
    %cst_5 = arith.constant dense<0.000000e+00> : vector<8x252xf32>
    %6 = tpu.matmul %5, %3, %cst_5 {dimension_numbers = #tpu.dot_dimension_numbers<[1], [0], [0], [1], [0, 0, 1, 1], [], []>} : vector<8x4xbf16>, vector<4x252xbf16>, vector<8x252xf32> -> vector<8x252xf32>
    %7 = arith.addf %2, %6 : vector<8x252xf32>
    %8 = vector.extract_strided_slice %1 {offsets = [0, 1], sizes = [4, 252], strides = [1, 1]} : vector<4x290xbf16> to vector<4x252xbf16>
    %c1 = arith.constant 1 : index
    %c0_6 = arith.constant 0 : index
    %c0_7 = arith.constant 0 : index
    %9 = vector.load %arg2[%c1, %c0_6, %c0_7] : memref<9x8x4xbf16, #tpu.memory_space<vmem>>, vector<1x8x4xbf16>
    %10 = vector.shape_cast %9 : vector<1x8x4xbf16> to vector<8x4xbf16>
    %cst_8 = arith.constant dense<0.000000e+00> : vector<8x252xf32>
    %11 = tpu.matmul %10, %8, %cst_8 {dimension_numbers = #tpu.dot_dimension_numbers<[1], [0], [0], [1], [0, 0, 1, 1], [], []>} : vector<8x4xbf16>, vector<4x252xbf16>, vector<8x252xf32> -> vector<8x252xf32>
    %12 = arith.addf %7, %11 : vector<8x252xf32>
    %13 = vector.extract_strided_slice %1 {offsets = [0, 2], sizes = [4, 252], strides = [1, 1]} : vector<4x290xbf16> to vector<4x252xbf16>
    %c2 = arith.constant 2 : index
    %c0_9 = arith.constant 0 : index
    %c0_10 = arith.constant 0 : index
    %14 = vector.load %arg2[%c2, %c0_9, %c0_10] : memref<9x8x4xbf16, #tpu.memory_space<vmem>>, vector<1x8x4xbf16>
    %15 = vector.shape_cast %14 : vector<1x8x4xbf16> to vector<8x4xbf16>
    %cst_11 = arith.constant dense<0.000000e+00> : vector<8x252xf32>
    %16 = tpu.matmul %15, %13, %cst_11 {dimension_numbers = #tpu.dot_dimension_numbers<[1], [0], [0], [1], [0, 0, 1, 1], [], []>} : vector<8x4xbf16>, vector<4x252xbf16>, vector<8x252xf32> -> vector<8x252xf32>
    %17 = arith.addf %12, %16 : vector<8x252xf32>
    %18 = vector.extract_strided_slice %1 {offsets = [0, 18], sizes = [4, 252], strides = [1, 1]} : vector<4x290xbf16> to vector<4x252xbf16>
    %c3 = arith.constant 3 : index
    %c0_12 = arith.constant 0 : index
    %c0_13 = arith.constant 0 : index
    %19 = vector.load %arg2[%c3, %c0_12, %c0_13] : memref<9x8x4xbf16, #tpu.memory_space<vmem>>, vector<1x8x4xbf16>
    %20 = vector.shape_cast %19 : vector<1x8x4xbf16> to vector<8x4xbf16>
    %cst_14 = arith.constant dense<0.000000e+00> : vector<8x252xf32>
    %21 = tpu.matmul %20, %18, %cst_14 {dimension_numbers = #tpu.dot_dimension_numbers<[1], [0], [0], [1], [0, 0, 1, 1], [], []>} : vector<8x4xbf16>, vector<4x252xbf16>, vector<8x252xf32> -> vector<8x252xf32>
    %22 = arith.addf %17, %21 : vector<8x252xf32>
    %23 = vector.extract_strided_slice %1 {offsets = [0, 19], sizes = [4, 252], strides = [1, 1]} : vector<4x290xbf16> to vector<4x252xbf16>
    %c4 = arith.constant 4 : index
    %c0_15 = arith.constant 0 : index
    %c0_16 = arith.constant 0 : index
    %24 = vector.load %arg2[%c4, %c0_15, %c0_16] : memref<9x8x4xbf16, #tpu.memory_space<vmem>>, vector<1x8x4xbf16>
    %25 = vector.shape_cast %24 : vector<1x8x4xbf16> to vector<8x4xbf16>
    %cst_17 = arith.constant dense<0.000000e+00> : vector<8x252xf32>
    %26 = tpu.matmul %25, %23, %cst_17 {dimension_numbers = #tpu.dot_dimension_numbers<[1], [0], [0], [1], [0, 0, 1, 1], [], []>} : vector<8x4xbf16>, vector<4x252xbf16>, vector<8x252xf32> -> vector<8x252xf32>
    %27 = arith.addf %22, %26 : vector<8x252xf32>
    %28 = vector.extract_strided_slice %1 {offsets = [0, 20], sizes = [4, 252], strides = [1, 1]} : vector<4x290xbf16> to vector<4x252xbf16>
    %c5 = arith.constant 5 : index
    %c0_18 = arith.constant 0 : index
    %c0_19 = arith.constant 0 : index
    %29 = vector.load %arg2[%c5, %c0_18, %c0_19] : memref<9x8x4xbf16, #tpu.memory_space<vmem>>, vector<1x8x4xbf16>
    %30 = vector.shape_cast %29 : vector<1x8x4xbf16> to vector<8x4xbf16>
    %cst_20 = arith.constant dense<0.000000e+00> : vector<8x252xf32>
    %31 = tpu.matmul %30, %28, %cst_20 {dimension_numbers = #tpu.dot_dimension_numbers<[1], [0], [0], [1], [0, 0, 1, 1], [], []>} : vector<8x4xbf16>, vector<4x252xbf16>, vector<8x252xf32> -> vector<8x252xf32>
    %32 = arith.addf %27, %31 : vector<8x252xf32>
    %33 = vector.extract_strided_slice %1 {offsets = [0, 36], sizes = [4, 252], strides = [1, 1]} : vector<4x290xbf16> to vector<4x252xbf16>
    %c6 = arith.constant 6 : index
    %c0_21 = arith.constant 0 : index
    %c0_22 = arith.constant 0 : index
    %34 = vector.load %arg2[%c6, %c0_21, %c0_22] : memref<9x8x4xbf16, #tpu.memory_space<vmem>>, vector<1x8x4xbf16>
    %35 = vector.shape_cast %34 : vector<1x8x4xbf16> to vector<8x4xbf16>
    %cst_23 = arith.constant dense<0.000000e+00> : vector<8x252xf32>
    %36 = tpu.matmul %35, %33, %cst_23 {dimension_numbers = #tpu.dot_dimension_numbers<[1], [0], [0], [1], [0, 0, 1, 1], [], []>} : vector<8x4xbf16>, vector<4x252xbf16>, vector<8x252xf32> -> vector<8x252xf32>
    %37 = arith.addf %32, %36 : vector<8x252xf32>
    %38 = vector.extract_strided_slice %1 {offsets = [0, 37], sizes = [4, 252], strides = [1, 1]} : vector<4x290xbf16> to vector<4x252xbf16>
    %c7 = arith.constant 7 : index
    %c0_24 = arith.constant 0 : index
    %c0_25 = arith.constant 0 : index
    %39 = vector.load %arg2[%c7, %c0_24, %c0_25] : memref<9x8x4xbf16, #tpu.memory_space<vmem>>, vector<1x8x4xbf16>
    %40 = vector.shape_cast %39 : vector<1x8x4xbf16> to vector<8x4xbf16>
    %cst_26 = arith.constant dense<0.000000e+00> : vector<8x252xf32>
    %41 = tpu.matmul %40, %38, %cst_26 {dimension_numbers = #tpu.dot_dimension_numbers<[1], [0], [0], [1], [0, 0, 1, 1], [], []>} : vector<8x4xbf16>, vector<4x252xbf16>, vector<8x252xf32> -> vector<8x252xf32>
    %42 = arith.addf %37, %41 : vector<8x252xf32>
    %43 = vector.extract_strided_slice %1 {offsets = [0, 38], sizes = [4, 252], strides = [1, 1]} : vector<4x290xbf16> to vector<4x252xbf16>
    %c8 = arith.constant 8 : index
    %c0_27 = arith.constant 0 : index
    %c0_28 = arith.constant 0 : index
    %44 = vector.load %arg2[%c8, %c0_27, %c0_28] : memref<9x8x4xbf16, #tpu.memory_space<vmem>>, vector<1x8x4xbf16>
    %45 = vector.shape_cast %44 : vector<1x8x4xbf16> to vector<8x4xbf16>
    %cst_29 = arith.constant dense<0.000000e+00> : vector<8x252xf32>
    %46 = tpu.matmul %45, %43, %cst_29 {dimension_numbers = #tpu.dot_dimension_numbers<[1], [0], [0], [1], [0, 0, 1, 1], [], []>} : vector<8x4xbf16>, vector<4x252xbf16>, vector<8x252xf32> -> vector<8x252xf32>
    %47 = arith.addf %42, %46 : vector<8x252xf32>
    %c0_30 = arith.constant 0 : index
    %c0_31 = arith.constant 0 : index
    %48 = vector.load %arg3[%c0_30, %c0_31] : memref<8x1xf32, #tpu.memory_space<vmem>>, vector<8x1xf32>
    %49 = vector.broadcast %48 : vector<8x1xf32> to vector<8x252xf32>
    %50 = arith.addf %47, %49 : vector<8x252xf32>
    %cst_32 = arith.constant 0.000000e+00 : f32
    %51 = vector.broadcast %cst_32 : f32 to vector<8x252xf32>
    %52 = arith.maximumf %50, %51 : vector<8x252xf32>
    %c0_33 = arith.constant 0 : index
    %c0_34 = arith.constant 0 : index
    %c0_35 = arith.constant 0 : index
    %53 = vector.load %arg4[%c0_33, %c0_34, %c0_35] : memref<1x8x252xf32, #tpu.memory_space<vmem>>, vector<1x8x252xf32>
    %54 = vector.shape_cast %53 : vector<1x8x252xf32> to vector<8x252xf32>
    %55 = vector.shape_cast %52 : vector<8x252xf32> to vector<1x8x252xf32>
    tpu.vector_store %arg4[%c0_33, %c0_34, %c0_35], %55 {strides = array<i32>} : memref<1x8x252xf32, #tpu.memory_space<vmem>>, vector<1x8x252xf32>,
    return
  }
  func.func @transform_0(%arg0: i32) -> (i32, i32, i32) {
    %c0_i32 = arith.constant 0 : i32
    %c0_i32_0 = arith.constant 0 : i32
    %c0_i32_1 = arith.constant 0 : i32
    return %arg0, %c0_i32, %c0_i32_0 : i32, i32, i32
  }
  func.func @transform_1(%arg0: i32) -> (i32, i32, i32) {
    %c0_i32 = arith.constant 0 : i32
    %c0_i32_0 = arith.constant 0 : i32
    %c0_i32_1 = arith.constant 0 : i32
    %c0_i32_2 = arith.constant 0 : i32
    return %c0_i32, %c0_i32_0, %c0_i32_1 : i32, i32, i32
  }
  func.func @transform_2(%arg0: i32) -> (i32, i32) {
    %c0_i32 = arith.constant 0 : i32
    %c0_i32_0 = arith.constant 0 : i32
    %c0_i32_1 = arith.constant 0 : i32
    return %c0_i32, %c0_i32_0 : i32, i32
  }
  func.func @transform_3(%arg0: i32) -> (i32, i32, i32) {
    %c0_i32 = arith.constant 0 : i32
    %c0_i32_0 = arith.constant 0 : i32
    %c0_i32_1 = arith.constant 0 : i32
    return %arg0, %c0_i32, %c0_i32_0 : i32, i32, i32
  }
}

</mosaic_0001>

<bundles_post_ra>
// kernel: tpu_custom_call.1
= control target key start
LH: loop header
LB: loop body
LE: loop exit
PB: predicated region body
PF: predicated region fallthrough
CT: control target
= control target key end

     0   :  { %8 = vsyncpa [#allocation3], 0  ;;  %s1067_s0 = inlined_call_operand.vmem [shape: bf16[2,4,290], index: 0, kind: input, shape index: {}]   ;;  %s1068_s1 = inlined_call_operand.vmem [shape: bf16[9,8,4], index: 1, kind: input, shape index: {}]   ;;  %s1069_s2 = inlined_call_operand.vmem [shape: f32[8,1], index: 2, kind: input, shape index: {}]   ;;  %s1070_s3 = inlined_call_operand.hbm [shape: f32[2,8,252], index: 3, kind: output, shape index: {}]  }
   0x1   :  { %10 = vsyncpa [#allocation3 + $0x1], 0  ;;  %s910_s12 = smov 0   ;;  %s912_s13 = smov 0  }
   0x2   :  { %s914_s14 = smov 0   ;;  %s916_s15 = smov 0  }
   0x3 LB: > { %s931_s16 = sadd.s32 4294967295, %s879_s15   ;;  %s728_s17 = sadd.s32 4294967294, %s879_s15   ;;  %s879_s15 = sphi %s916_s15, %s1076_s15   ;;  %s875_s14 = sphi %s914_s14, %s1075_s14   ;;  %s871_s13 = sphi %s912_s13, %s1074_s13   ;;  %s867_s12 = sphi %s910_s12, %s1073_s12  }
   0x4   : > { %s935_s18 = sadd.s32 1, %s879_s15   ;;  %s91_s19 = sadd.s32 1, %s875_s14 }
   0x5   : > { %s88_s20 = ssub.s32 %s879_s15, %s935_s18  ;;  %p101_p0 = scmp.ne.s32.totalorder %s875_s14, %s871_s13 }
   0x6   : > { %p89_p1 = scmp.eq.s32.totalorder %s88_s20, 0  ;;  %p102_p2 = scmp.eq.s32.totalorder %s931_s16, 1 }
   0x7   : > { %p107_p3 = scmp.ne.s32.totalorder %s871_s13, %s867_s12  ;;  %p108_p4 = scmp.eq.s32.totalorder %s728_s17, 1 }
   0x8   : > { %s946_s21 = scalar_select %p89_p1, %s875_s14, %s91_s19  }
   0x9   : > { %p948_p5 = por %p102_p2, %p101_p0  ;;  %p952_p6 = por %p108_p4, %p107_p3 }
   0xa   : > { %p731_p7 = scmp.ge.s32.totalorder %s879_s15, 1  ;;  %p140_p8 = scmp.lt.s32.totalorder %s879_s15, 3 }
   0xc   : > { %p141_p9 = pnand %p731_p7, %p140_p8 }
   0xd   : > { %p164_p10 = scmp.lt.s32.totalorder (!%p141_p9), %s931_s16, 1  ;;  %s881_s29 = smov (!%p141_p9), 127  }
   0xe   : > { %144 = sbr.rel (%p141_p9) target bundleno = 361 (0x169), region = 32  ;;  %s882_s30 = smov (!%p141_p9), 126  }
   0xf   : > { %s883_s4 = smov (!%p141_p9), 110   ;;  %s884_s5 = smov (!%p141_p9), 109  }
  0x10   : > { %s885_s6 = smov (!%p141_p9), 108   ;;  %s886_s7 = smov (!%p141_p9), 92  }
  0x11   : > { %s887_s8 = smov (!%p141_p9), 91   ;;  %s888_s9 = smov (!%p141_p9), 90  }
  0x12   : > { %s161_s17 = sand.u32 (!%p141_p9), 1, %s871_s13   ;;  %s765_s20 = sshll.u32 (!%p141_p9), %s931_s16, 4 }
  0x13   : > { %s165_s24 = scalar_select %p164_p10, %s931_s16, 1  ;;  %vm190_vm0 = vcmask 1041408   ;;  %v171_v27 = vld [vmem:[%s1068_s1] sm:$0xf]  ;;  %vm186_vm1 = vcmask 31744   ;;  %vm184_vm2 = vcmask 1039360  }
  0x14   : > { %vm324_vm3 = vcmask 900096   ;;  %v734_v36 = vld [vmem:[%s1068_s1 + $0x4] sm:$0xf]  ;;  %v742_v38 = vld [vmem:[%s1068_s1 + $0xc] sm:$0xf]  ;;  %vm270_vm4 = vcmask 1031168   ;;  %s664_s26 = scalar_lea.hbm %s1070_s3, %s765_s20 }
  0x15   : > { %s766_s25 = smul.u32 6, %s165_s24  ;;  %v739_v46 = vld [vmem:[%s1068_s1 + $0x8] sm:$0xf]  ;;  %vm379_vm5 = vcmask 891904   ;;  %vm434_vm6 = vcmask 883712   ;;  %vm489_vm7 = vcmask 752640  }
  0x16   : > { %v745_v57 = vld [vmem:[%s1068_s1 + $0x10] sm:$0xf]  ;;  %v748_v63 = vld [vmem:[%s1068_s1 + $0x14] sm:$0xf]  ;;  %vm544_vm8 = vcmask 744448   ;;  %vm599_vm9 = vcmask 736256  }
  0x17   : > { %s168_s28 = scalar_lea.vmem %s1067_s0, %s766_s25  ;;  %s732_s19 = sshll.u32 %s161_s17, 4  ;;  %vm650_vm10 = vcmask 1014784  }
  0x18   : > { %v170_v0 = vld [vmem:[%s168_s28] sm:$0x3f]  ;;  %s163_s27 = scalar_lea.vmem [#allocation2], %s732_s19  ;;  %s653_s16 = scalar_lea.sflag [#allocation3], %s161_s17 }
  0x19   : > { %175 = vst [vmem:[#allocation1] ss:$4 sm:$0xff] %v170_v0  ;;  %s666_s28 = sshll.u32 %s163_s27, 4  ;;  %s667_s28 = int_to_ptr.vmem [resolvable:$true] %s666_s28 }
  0x20   : > { %v176_v1 = vld.sshfl [vmem:[#allocation1] sm:$0xff pattern:$0x73625140]  ;;  %v178_v2 = vld.sshfl [vmem:[#allocation1 + $0x8] sm:$0xff pattern:$0x73625140] }
  0x21   : > { %180 = vrot.lane.b32.xlu0 %v176_v1, %s881_s29  ;;  %223 = vst [vmem:[#allocation1] ss:$4 sm:$0xff] %v170_v0  ;;  %v889_v1 = vmov 0  }
  0x22   : > { %815 = vset.pattern.permute.xlu1 %v889_v1  ;;  %816 = vset.pattern.permute.xlu0 %v889_v1 }
  0x28   : > { %v224_v3 = vld.sshfl [vmem:[#allocation1] sm:$0xff pattern:$0x73625140]  ;;  %v225_v4 = vld.sshfl [vmem:[#allocation1 + $0x8] sm:$0xff pattern:$0x73625140] }
  0x29   : > { %182 = vrot.lane.b32.xlu0 %v178_v2, %s881_s29  ;;  %261 = vst [vmem:[#allocation1] ss:$4 sm:$0xff] %v170_v0  ;;  %v229_v25 = vsel %vm190_vm0, %v224_v3, 0  ;;  %v231_v26 = vsel %vm190_vm0, %v225_v4, 0  ;;  %s668_s29 = sshll.u32 %s664_s26, 4  ;;  %s669_s29 = int_to_ptr.hbm [resolvable:$true] %s668_s29 }
  0x2a   : > { %240 = vmatpush.bf16.msra.mxu2 %v229_v25  ;;  %253 = vmatpush.bf16.msra.mxu3 %v231_v26  ;;  %v757_v25 = vld [vmem:[%s1068_s1 + $0x20] sm:$0xf] }
  0x2d   : > { %737 = vmatmul.msk.bf16.vlgmr.msra.gmra.mxu2 %vm186_vm1, %v171_v27  ;;  %738 = vmatmul.msk.bf16.vlgmr.msra.gmra.mxu3 %vm186_vm1, %v171_v27 }
  0x30   : > { %v262_v5 = vld.sshfl [vmem:[#allocation1] sm:$0xff pattern:$0x73625140]  ;;  %v264_v6 = vld.sshfl [vmem:[#allocation1 + $0x8] sm:$0xff pattern:$0x73625140] }
  0x31   : > { %266 = vrot.lane.b32.xlu1 %v262_v5, %s882_s30  ;;  %311 = vst [vmem:[#allocation1] ss:$4 sm:$0xff] %v170_v0 }
  0x38   : > { %v312_v7 = vld.sshfl [vmem:[#allocation1] sm:$0xff pattern:$0x73625140]  ;;  %v314_v8 = vld.sshfl [vmem:[#allocation1 + $0x8] sm:$0xff pattern:$0x73625140] }
  0x39   : > { %268 = vrot.lane.b32.xlu1 %v264_v6, %s882_s30  ;;  %v316_v9 = vld.sshfl [vmem:[#allocation1 + $0x10] sm:$0xff pattern:$0x73625140]  ;;  %318 = vrot.lane.b32.xlu2 %v312_v7, %s883_s4  ;;  %s831_s30 = sshra.s32 %s669_s29, 4  ;;  %s832_s30 = int_to_ptr.hbm [resolvable:$true] %s831_s30 }
  0x3a   : > { %322 = vrot.lane.b32.xlu0 %v316_v9, %s883_s4  ;;  %366 = vst [vmem:[#allocation1] ss:$4 sm:$0xff] %v170_v0  ;;  %p838_p0 = scmp.lt.s32.totalorder %s832_s30, %s1070_s3 }
  0x41   : > { %v371_v10 = vld.sshfl [vmem:[#allocation1 + $0x10] sm:$0xff pattern:$0x73625140]  ;;  %v369_v11 = vld.sshfl [vmem:[#allocation1 + $0x8] sm:$0xff pattern:$0x73625140]  ;;  %320 = vrot.lane.b32.xlu2 %v314_v8, %s883_s4 }
  0x42   : > { %377 = vrot.lane.b32.xlu0 %v371_v10, %s884_s5  ;;  %v367_v12 = vld.sshfl [vmem:[#allocation1] sm:$0xff pattern:$0x73625140]  ;;  %v751_v10 = vld [vmem:[%s1068_s1 + $0x18] sm:$0xf]  ;;  %s833_s4 = scalar_lea.hbm %s832_s30, 16 }
  0x43   : > { %373 = vrot.lane.b32.xlu1 %v367_v12, %s884_s5  ;;  %421 = vst [vmem:[#allocation1] ss:$4 sm:$0xff] %v170_v0  ;;  %p834_p11 = scmp.ne.s32.totalorder %s832_s30, %s833_s4 }
  0x45   : > { %p835_p12 = pnand %p834_p11, %p948_p5 }
  0x47   : > { %p836_p13 = pneg %p835_p12 }
  0x49   : > { %375 = vrot.lane.b32.xlu2 %v369_v11, %s884_s5 }
  0x4a   : > { %v426_v13 = vld.sshfl [vmem:[#allocation1 + $0x10] sm:$0xff pattern:$0x73625140]  ;;  %v424_v14 = vld.sshfl [vmem:[#allocation1 + $0x8] sm:$0xff pattern:$0x73625140] }
  0x4b   : > { %432 = vrot.lane.b32.xlu0 %v426_v13, %s885_s6  ;;  %v422_v15 = vld.sshfl [vmem:[#allocation1] sm:$0xff pattern:$0x73625140] }
  0x4c   : > { %428 = vrot.lane.b32.xlu1 %v422_v15, %s885_s6  ;;  %476 = vst [vmem:[#allocation1] ss:$4 sm:$0xff] %v170_v0 }
  0x51   : > { %430 = vrot.lane.b32.xlu2 %v424_v14, %s885_s6 }
  0x53   : > { %v481_v16 = vld.sshfl [vmem:[#allocation1 + $0x10] sm:$0xff pattern:$0x73625140]  ;;  %v479_v17 = vld.sshfl [vmem:[#allocation1 + $0x8] sm:$0xff pattern:$0x73625140] }
  0x54   : > { %487 = vrot.lane.b32.xlu0 %v481_v16, %s886_s7  ;;  %v477_v18 = vld.sshfl [vmem:[#allocation1] sm:$0xff pattern:$0x73625140] }
  0x55   : > { %483 = vrot.lane.b32.xlu1 %v477_v18, %s886_s7  ;;  %531 = vst [vmem:[#allocation1] ss:$4 sm:$0xff] %v170_v0 }
  0x59   : > { %485 = vrot.lane.b32.xlu2 %v479_v17, %s886_s7  ;;  %v754_v17 = vld [vmem:[%s1068_s1 + $0x1c] sm:$0xf]  ;;  %s837_s7 = scalar_lea.hbm %s1070_s3, 32 }
  0x5a   : > { %p839_p1 = scmp.lt.s32.totalorder %s837_s7, %s833_s4 }
  0x5c   : > { %v536_v19 = vld.sshfl [vmem:[#allocation1 + $0x10] sm:$0xff pattern:$0x73625140]  ;;  %v534_v20 = vld.sshfl [vmem:[#allocation1 + $0x8] sm:$0xff pattern:$0x73625140]  ;;  %p840_p2 = por %p839_p1, %p838_p0 }
  0x5d   : > { %542 = vrot.lane.b32.xlu0 %v536_v19, %s887_s8  ;;  %v532_v21 = vld.sshfl [vmem:[#allocation1] sm:$0xff pattern:$0x73625140] }
  0x5e   : > { %538 = vrot.lane.b32.xlu1 %v532_v21, %s887_s8  ;;  %586 = vst [vmem:[#allocation1] ss:$4 sm:$0xff] %v170_v0  ;;  %v639_v0 = vld [vmem:[%s1069_s2] sm:$0xff]  ;;  %p841_p3 = pnand %p840_p2, %p836_p13 }
  0x61   : > { %540 = vrot.lane.b32.xlu2 %v534_v20, %s887_s8 }
  0x65   : > { %v591_v22 = vld.sshfl [vmem:[#allocation1 + $0x10] sm:$0xff pattern:$0x73625140]  ;;  %v587_v23 = vld.sshfl [vmem:[#allocation1] sm:$0xff pattern:$0x73625140] }
  0x66   : > { %597 = vrot.lane.b32.xlu0 %v591_v22, %s888_s9  ;;  %593 = vrot.lane.b32.xlu1 %v587_v23, %s888_s9  ;;  %v589_v24 = vld.sshfl [vmem:[#allocation1 + $0x8] sm:$0xff pattern:$0x73625140] }
  0x69   : > { %595 = vrot.lane.b32.xlu2 %v589_v24, %s888_s9 }
  0x6e   : > { %642 = vperm.xlu1 %815, %v639_v0  }
  0x93   : > { %v181_v28 = vpop.permute.xlu0 %180  ;;  %v319_v29 = vpop.permute.xlu2 %318 }
  0x9b   : > { %v183_v30 = vpop.permute.xlu0 %182  ;;  %v321_v31 = vpop.permute.xlu2 %320 }
  0x9c   : > { %v195_v32 = vsel %vm190_vm0, %v183_v30, 0  ;;  %v185_v33 = vsel %vm184_vm2, %v181_v28, %v183_v30  ;;  %v325_v34 = vsel %vm324_vm3, %v319_v29, %v321_v31 }
  0x9d   : > { %217 = vmatpush.bf16.msra.mxu1 %v195_v32  ;;  %v192_v35 = vsel %vm190_vm0, %v185_v33, 0  ;;  %v331_v37 = vsel %vm190_vm0, %v325_v34, 0 }
  0x9e   : > { %204 = vmatpush.bf16.msra.mxu0 %v192_v35  ;;  %343 = vmatpush.bf16.msrb.mxu2 %v331_v37 }
  0xa0   : > { %736 = vmatmul.msk.bf16.vlgmr.msra.gmra.mxu1 %vm186_vm1, %v734_v36 }
  0xa1   : > { %735 = vmatmul.msk.bf16.vlgmr.msra.gmra.mxu0 %vm186_vm1, %v734_v36  ;;  %743 = vmatmul.msk.bf16.vlgmr.msrb.gmra.mxu2 %vm186_vm1, %v742_v38 }
  0xa3   : > { %v267_v39 = vpop.permute.xlu1 %266  ;;  %v376_v48 = vpop.permute.xlu2 %375 }
  0xab   : > { %v269_v40 = vpop.permute.xlu1 %268  ;;  %v431_v55 = vpop.permute.xlu2 %430 }
  0xac   : > { %v323_v41 = vpop.permute.xlu0 %322  ;;  %v279_v42 = vsel %vm190_vm0, %v269_v40, 0  ;;  %v271_v43 = vsel %vm270_vm4, %v267_v39, %v269_v40 }
  0xad   : > { %301 = vmatpush.bf16.msrb.mxu1 %v279_v42  ;;  %v276_v44 = vsel %vm190_vm0, %v271_v43, 0  ;;  %v326_v45 = vsel %vm324_vm3, %v321_v31, %v323_v41 }
  0xae   : > { %288 = vmatpush.bf16.msrb.mxu0 %v276_v44  ;;  %v334_v47 = vsel %vm190_vm0, %v326_v45, 0 }
  0xaf   : > { %356 = vmatpush.bf16.msrb.mxu3 %v334_v47 }
  0xb0   : > { %741 = vmatmul.msk.bf16.vlgmr.msrb.gmra.mxu1 %vm186_vm1, %v739_v46  ;;  %v242_v26 = vpop.f32.mrf.mxu2  ;;  %v255_v27 = vpop.f32.mrf.mxu3 }
  0xb1   : > { %740 = vmatmul.msk.bf16.vlgmr.msrb.gmra.mxu0 %vm186_vm1, %v739_v46 }
  0xb2   : > { %744 = vmatmul.msk.bf16.vlgmr.msrb.gmra.mxu3 %vm186_vm1, %v742_v38 }
  0xb3   : > { %v486_v2 = vpop.permute.xlu2 %485 }
  0xb4   : > { %v378_v49 = vpop.permute.xlu0 %377 }
  0xb5   : > { %v381_v50 = vsel %vm379_vm5, %v376_v48, %v378_v49  ;;  %v374_v51 = vpop.permute.xlu1 %373 }
  0xb6   : > { %v389_v52 = vsel %vm190_vm0, %v381_v50, 0  ;;  %v380_v53 = vsel %vm379_vm5, %v374_v51, %v376_v48 }
  0xb7   : > { %v386_v54 = vsel %vm190_vm0, %v380_v53, 0  ;;  %411 = vmatpush.bf16.msra.mxu1 %v389_v52 }
  0xb8   : > { %398 = vmatpush.bf16.msra.mxu0 %v386_v54  ;;  %v244_v28 = vpop.f32.mrf.mxu2  ;;  %v257_v29 = vpop.f32.mrf.mxu3 }
  0xbb   : > { %v541_v9 = vpop.permute.xlu2 %540 }
  0xbd   : > { %v433_v56 = vpop.permute.xlu0 %432 }
  0xbe   : > { %v436_v58 = vsel %vm434_vm6, %v431_v55, %v433_v56  ;;  %v429_v59 = vpop.permute.xlu1 %428 }
  0xbf   : > { %v444_v60 = vsel %vm190_vm0, %v436_v58, 0  ;;  %v435_v61 = vsel %vm434_vm6, %v429_v59, %v431_v55 }
  0xc0   : > { %v441_v62 = vsel %vm190_vm0, %v435_v61, 0  ;;  %466 = vmatpush.bf16.msra.mxu3 %v444_v60  ;;  %747 = vmatmul.msk.bf16.vlgmr.msra.gmra.mxu1 %vm186_vm1, %v745_v57 }
  0xc1   : > { %453 = vmatpush.bf16.msra.mxu2 %v441_v62  ;;  %746 = vmatmul.msk.bf16.vlgmr.msra.gmra.mxu0 %vm186_vm1, %v745_v57 }
  0xc3   : > { %750 = vmatmul.msk.bf16.vlgmr.msra.gmra.mxu3 %vm186_vm1, %v748_v63  ;;  %v596_v18 = vpop.permute.xlu2 %595 }
  0xc4   : > { %749 = vmatmul.msk.bf16.vlgmr.msra.gmra.mxu2 %vm186_vm1, %v748_v63 }
  0xc6   : > { %v488_v3 = vpop.permute.xlu0 %487 }
  0xc7   : > { %v491_v4 = vsel %vm489_vm7, %v486_v2, %v488_v3  ;;  %v484_v5 = vpop.permute.xlu1 %483 }
  0xc8   : > { %v499_v6 = vsel %vm190_vm0, %v491_v4, 0  ;;  %v490_v7 = vsel %vm489_vm7, %v484_v5, %v486_v2 }
  0xc9   : > { %v496_v8 = vsel %vm190_vm0, %v490_v7, 0  ;;  %521 = vmatpush.bf16.msrb.mxu1 %v499_v6 }
  0xca   : > { %508 = vmatpush.bf16.msrb.mxu0 %v496_v8 }
  0xcf   : > { %v543_v11 = vpop.permute.xlu0 %542 }
  0xd0   : > { %v546_v12 = vsel %vm544_vm8, %v541_v9, %v543_v11  ;;  %v539_v13 = vpop.permute.xlu1 %538  ;;  %753 = vmatmul.msk.bf16.vlgmr.msrb.gmra.mxu1 %vm186_vm1, %v751_v10 }
  0xd1   : > { %v554_v14 = vsel %vm190_vm0, %v546_v12, 0  ;;  %v545_v15 = vsel %vm544_vm8, %v539_v13, %v541_v9  ;;  %752 = vmatmul.msk.bf16.vlgmr.msrb.gmra.mxu0 %vm186_vm1, %v751_v10 }
  0xd2   : > { %v551_v16 = vsel %vm190_vm0, %v545_v15, 0  ;;  %576 = vmatpush.bf16.msrb.mxu3 %v554_v14 }
  0xd3   : > { %563 = vmatpush.bf16.msrb.mxu2 %v551_v16 }
  0xd5   : > { %756 = vmatmul.msk.bf16.vlgmr.msrb.gmra.mxu3 %vm186_vm1, %v754_v17 }
  0xd6   : > { %755 = vmatmul.msk.bf16.vlgmr.msrb.gmra.mxu2 %vm186_vm1, %v754_v17 }
  0xd8   : > { %v598_v19 = vpop.permute.xlu0 %597  ;;  %v594_v20 = vpop.permute.xlu1 %593 }
  0xd9   : > { %v601_v21 = vsel %vm599_vm9, %v596_v18, %v598_v19  ;;  %v600_v22 = vsel %vm599_vm9, %v594_v20, %v596_v18 }
  0xda   : > { %v609_v23 = vsel %vm190_vm0, %v601_v21, 0  ;;  %v606_v24 = vsel %vm190_vm0, %v600_v22, 0 }
  0xdb   : > { %631 = vmatpush.bf16.msra.mxu1 %v609_v23  ;;  %618 = vmatpush.bf16.msra.mxu0 %v606_v24 }
  0xe0   : > { %759 = vmatmul.msk.bf16.vlgmr.msra.gmra.mxu1 %vm186_vm1, %v757_v25  ;;  %v643_v7 = vpop.permute.xlu1 %642 }
  0xe1   : > { %758 = vmatmul.msk.bf16.vlgmr.msra.gmra.mxu0 %vm186_vm1, %v757_v25 }
 0x11d   : > { %v219_v30 = vpop.f32.mrf.mxu1 }
 0x11e   : > { %v206_v31 = vpop.f32.mrf.mxu0  ;;  %v256_v53 = vadd.f32 %v255_v27, %v219_v30 }
 0x11f   : > { %v243_v51 = vadd.f32 %v242_v26, %v206_v31 }
 0x124   : > { %v345_v32 = vpop.f32.mrf.mxu2 }
 0x125   : > { %v221_v33 = vpop.f32.mrf.mxu1 }
 0x126   : > { %v208_v34 = vpop.f32.mrf.mxu0 }
 0x12c   : > { %v347_v35 = vpop.f32.mrf.mxu2 }
 0x12d   : > { %v303_v36 = vpop.f32.mrf.mxu1 }
 0x12e   : > { %v290_v37 = vpop.f32.mrf.mxu0  ;;  %v308_v55 = vadd.f32 %v303_v36, %v256_v53 }
 0x12f   : > { %v307_v54 = vadd.f32 %v290_v37, %v243_v51 }
 0x131   : > { %v362_v57 = vadd.f32 %v345_v32, %v307_v54 }
 0x135   : > { %v358_v38 = vpop.f32.mrf.mxu3  ;;  %v305_v39 = vpop.f32.mrf.mxu1 }
 0x136   : > { %v292_v40 = vpop.f32.mrf.mxu0  ;;  %v363_v56 = vadd.f32 %v358_v38, %v308_v55 }
 0x13d   : > { %v360_v41 = vpop.f32.mrf.mxu3  ;;  %v413_v42 = vpop.f32.mrf.mxu1 }
 0x13e   : > { %v400_v43 = vpop.f32.mrf.mxu0  ;;  %v418_v59 = vadd.f32 %v413_v42, %v363_v56 }
 0x13f   : > { %v417_v61 = vadd.f32 %v400_v43, %v362_v57 }
 0x145   : > { %v415_v44 = vpop.f32.mrf.mxu1 }
 0x146   : > { %v468_v45 = vpop.f32.mrf.mxu3  ;;  %v402_v46 = vpop.f32.mrf.mxu0 }
 0x147   : > { %v455_v47 = vpop.f32.mrf.mxu2  ;;  %v473_v62 = vadd.f32 %v468_v45, %v418_v59 }
 0x148   : > { %v472_v0 = vadd.f32 %v455_v47, %v417_v61 }
 0x14d   : > { %v523_v48 = vpop.f32.mrf.mxu1 }
 0x14e   : > { %v470_v49 = vpop.f32.mrf.mxu3  ;;  %v510_v50 = vpop.f32.mrf.mxu0  ;;  %v528_v2 = vadd.f32 %v523_v48, %v473_v62 }
 0x14f   : > { %v457_v52 = vpop.f32.mrf.mxu2  ;;  %v527_v3 = vadd.f32 %v510_v50, %v472_v0 }
 0x155   : > { %v525_v58 = vpop.f32.mrf.mxu1 }
 0x156   : > { %v512_v60 = vpop.f32.mrf.mxu0 }
 0x158   : > { %v578_v63 = vpop.f32.mrf.mxu3 }
 0x159   : > { %v565_v1 = vpop.f32.mrf.mxu2  ;;  %v583_v4 = vadd.f32 %v578_v63, %v528_v2 }
 0x15a   : > { %v582_v5 = vadd.f32 %v565_v1, %v527_v3 }
 0x15d   : > { %v633_v6 = vpop.f32.mrf.mxu1 }
 0x15e   : > { %v638_v8 = vadd.f32 %v633_v6, %v583_v4  ;;  %v620_v9 = vpop.f32.mrf.mxu0 }
 0x15f   : > { %v637_v10 = vadd.f32 %v620_v9, %v582_v5 }
 0x160   : > { %v646_v11 = vadd.f32 %v643_v7, %v638_v8  ;;  %v580_v12 = vpop.f32.mrf.mxu3 }
 0x161   : > { %v645_v13 = vadd.f32 %v643_v7, %v637_v10  ;;  %v567_v14 = vpop.f32.mrf.mxu2 }
 0x162   : > { %v648_v15 = vmax.f32 %v646_v11, 0.0 }
 0x163   : > { %v647_v16 = vmax.f32 %v645_v13, 0.0 }
 0x164   : > { %651 = vst.msk [vmem:[%s163_s27 + $0x8] sm:$0xff] %vm650_vm10, %v648_v15 }
 0x165   : > { %649 = vst [vmem:[%s163_s27] sm:$0xff] %v647_v16  ;;  %v635_v17 = vpop.f32.mrf.mxu1 }
 0x166   : > { %v622_v18 = vpop.f32.mrf.mxu0 }
 0x167   : > { %844 = shalt.err (!%p841_p3)
}
 0x168   : > { %767 = dma.vmem_to_hbm [thread:$0]  (%p948_p5), %s667_s28, 256, %s669_s29, %s653_s16  }
 0x169 PF: > { %p773_p4 = scmp.ge.s32.totalorder %s879_s15, 2  ;;  %s680_s10 = sand.u32 1, %s867_s12  }
 0x16a   : > { %s681_s11 = scalar_lea.sflag [#allocation3], %s680_s10 }
 0x16b   : > { %p770_p7 = pnand %p773_p4, %p952_p6 }
 0x16d   : > { %p771_p8 = pneg %p770_p7 }
 0x16f   : > { %862 = dma.done.wait (%p771_p8), %s681_s11, 256  }
 0x170   : > { %864 = vsyncadd (%p771_p8), %s681_s11, 4294967040  ;;  %p13_p9 = scmp.ge.s32.totalorder %s935_s18, 4   ;;  %s1073_s12 = smov %s871_s13 }
 0x171   : > { %s1074_s13 = smov %s875_s14  ;;  %s1075_s14 = smov %s946_s21 }
 0x172   : > { %s1076_s15 = smov %s935_s18  ;;  %15 = sbr.rel (!%p13_p9) target bundleno = 3 (0x3), region = 75 }
 0x177   :  { %687 = vsyncpa [#allocation3], 1 }
 0x178   :  { %689 = vsyncpa [#allocation3 + $0x1], 1 }

</bundles_post_ra>
